<compile_context>
chip_gen: v7x
topology: tpu7x:2x2x1
jax: 0.10.0
libtpu: 0.0.40
codegen_flags: <defaults>
</compile_context>

<pallas_src>
import jax
import jax.numpy as jnp
from jax.experimental import pallas as pl
from jax.experimental.pallas import tpu as pltpu

PAD = 128           # hidden width / lane dimension
IN_DIM = 13         # raw input features
IN_PAD = 16         # padded input features (64-byte-aligned HBM rows)
OUT_DIM = 2         # final output width
N_FUSED = 7         # resident 128x128 layers: L1..L5, fused(L6_out, fc1), fc2
TB_MAX = 2048       # max batch rows per grid step

# Original module layer dims (in, out, relu) in forward order.
LAYER_DIMS = [
    (13, 128, True),
    (128, 128, True),
    (128, 128, True),
    (128, 128, True),
    (128, 128, True),
    (128, 128, True),
    (128, 56, False),   # tree output layer (no relu) -- fused with fc1
    (56, 128, True),    # fc1
    (128, 128, True),   # fc2
    (128, 2, False),    # fc3 (no relu) -- done on VPU/XLU in the kernel
]


def mlp_kernel(x_ref, w0_ref, w_ref, b_ref, w9_ref, o_ref):
    """x_ref:(tb,16)f32  w0_ref:(16,128)f32  w_ref:(7,128,128)bf16
    b_ref:(9,128)f32 (rows 0..7 = layer biases, row 8 lanes 0..1 = fc3 bias)
    w9_ref:(8,128)f32 (rows 0..1 = fc3 weight columns)  o_ref:(tb,2)f32"""
    b_all = b_ref[...]                                            # (9,128) f32

    # Layer 0 (16 -> 128) in f32: K is tiny, MXU cost negligible.
    h32 = jnp.dot(x_ref[...], w0_ref[...], preferred_element_type=jnp.float32)
    h32 = jnp.maximum(h32 + b_all[0:1, :], 0.0)
    h = h32.astype(jnp.bfloat16)

    # Seven resident 128x128 layers (all ReLU): bf16 activations, f32 acc.
    # Static 7-way unroll; each weight tile is only 8 vregs.  (Switch to
    # lax.fori_loop(unroll=True) only if a bundle dump shows spill traffic.)
    for li in range(N_FUSED):
        acc = jnp.dot(h, w_ref[li], preferred_element_type=jnp.float32)
        h32 = jnp.maximum(acc + b_all[li + 1:li + 2, :], 0.0)
        h = h32.astype(jnp.bfloat16)

    # fc3 (128 -> 2): VPU multiply + XLU lane reduction per output column
    # instead of a zero-padded MXU matmul (MXU is the binding unit; VPU/XLU
    # have slack).  bf16 * f32 promotes to f32; reductions accumulate in f32.
    w9 = w9_ref[...]                                              # (8,128) f32
    o0 = jnp.sum(h * w9[0:1, :], axis=-1, keepdims=True)          # (tb,1) f32
    o1 = jnp.sum(h * w9[1:2, :], axis=-1, keepdims=True)          # (tb,1) f32
    out = jnp.concatenate([o0, o1], axis=-1) + b_all[8:9, 0:OUT_DIM]
    o_ref[...] = out.astype(o_ref.dtype)


def _round_up(x, m):
    return ((x + m - 1) // m) * m


def _choose_tiles(batch):
    """Pick (rows_per_tile, padded_batch)."""
    rows = _round_up(max(batch, 1), 8)
    if rows <= 16:
        return rows, rows                        # single tiny tile
    if rows <= 2 * TB_MAX:
        # Exactly 2 grid steps: keeps both v7x TensorCores busy on the
        # 'parallel' axis; costs at most one extra ~0.35us step on 1-TC chips.
        tb = _round_up((rows + 1) // 2, 8)
        return tb, 2 * tb
    # Large batch: biggest tile that does not waste too much padded compute.
    # ~0.35us per grid step ~= 256 rows of MXU work at these layer widths.
    best = None
    for tb in (2048, 1024, 512, 256):
        bpad = _round_up(rows, tb)
        cost = bpad + 256 * (bpad // tb)
        if best is None or cost < best[0] or (cost == best[0] and tb > best[1]):
            best = (cost, tb, bpad)
    return best[1], best[2]


@jax.jit
def node_model_forward(x, weights, biases):
    """x: (B, 13) f32.  weights[i]: (in, out) f32.  biases[i]: (out,) f32."""
    batch = x.shape[0]
    tb, bpad = _choose_tiles(batch)
    nbt = bpad // tb

    # Pad rows to the tile grid and features 13 -> 16 (aligned DMA rows).
    x_p = jnp.pad(x.astype(jnp.float32),
                  ((0, bpad - batch), (0, IN_PAD - IN_DIM)))

    w = [jnp.asarray(wi, jnp.float32) for wi in weights]
    b = [jnp.asarray(bi, jnp.float32) for bi in biases]

    # Exact fold of (128->56, no relu) with (56->128, relu):
    #   relu((x W6 + b6) W7 + b7) == relu(x (W6 W7) + (b6 W7 + b7)).
    w67 = w[6] @ w[7]                                             # (128,128)
    b67 = b[6] @ w[7] + b[7]                                      # (128,)

    w0 = jnp.pad(w[0], ((0, IN_PAD - IN_DIM), (0, 0)))            # (16,128) f32
    w_stack = jnp.stack([w[1], w[2], w[3], w[4], w[5], w67, w[8]]
                        ).astype(jnp.bfloat16)                    # (7,128,128)

    b9_row = jnp.zeros((PAD,), jnp.float32).at[:OUT_DIM].set(b[9])
    b_stack = jnp.stack([b[0], b[1], b[2], b[3], b[4], b[5], b67, b[8],
                         b9_row]).astype(jnp.float32)             # (9,128)
    w9t = jnp.zeros((8, PAD), jnp.float32).at[:OUT_DIM, :].set(w[9].T)

    flops = 2 * bpad * (IN_PAD * PAD + N_FUSED * PAD * PAD + PAD * OUT_DIM)
    bytes_accessed = (x_p.size * 4 + w0.size * 4 + w_stack.size * 2
                      + b_stack.size * 4 + w9t.size * 4 + bpad * OUT_DIM * 4)

    out = pl.pallas_call(
        mlp_kernel,
        out_shape=jax.ShapeDtypeStruct((bpad, OUT_DIM), jnp.float32),
        grid=(nbt,),
        in_specs=[
            pl.BlockSpec((tb, IN_PAD), lambda i: (i, 0)),         # x tile/step
            pl.BlockSpec((IN_PAD, PAD), lambda i: (0, 0)),        # resident
            pl.BlockSpec((N_FUSED, PAD, PAD), lambda i: (0, 0, 0)),
            pl.BlockSpec((N_FUSED + 2, PAD), lambda i: (0, 0)),
            pl.BlockSpec((8, PAD), lambda i: (0, 0)),
        ],
        out_specs=pl.BlockSpec((tb, OUT_DIM), lambda i: (i, 0)),
        compiler_params=pltpu.CompilerParams(
            dimension_semantics=("parallel",)),
        cost_estimate=pl.CostEstimate(
            flops=flops, transcendentals=0, bytes_accessed=bytes_accessed),
    )(x_p, w0, w_stack, b_stack, w9t)

    return out[:batch]                                            # (B, 2)


def init_params(key):
    """PyTorch-style uniform(-1/sqrt(fan_in), 1/sqrt(fan_in)) init."""
    weights, biases = [], []
    for i, (din, dout, _) in enumerate(LAYER_DIMS):
        kw, kb = jax.random.split(jax.random.fold_in(key, i))
        bound = 1.0 / jnp.sqrt(jnp.float32(din))
        # stored as (in, out) so the kernel does x @ W (== x @ W_torch.T)
        weights.append(
            jax.random.uniform(kw, (din, dout), jnp.float32, -bound, bound))
        biases.append(
            jax.random.uniform(kb, (dout,), jnp.float32, -bound, bound))
    return weights, biases


def reference_forward(x, weights, biases):
    h = x
    for (_, _, relu), w, b in zip(LAYER_DIMS, weights, biases):
        h = h @ w + b
        if relu:
            h = jnp.maximum(h, 0.0)
    return h


if __name__ == "__main__":
    key = jax.random.PRNGKey(0)
    kx, kp = jax.random.split(key)

    batch = 8
    x = jax.random.normal(kx, (batch, IN_DIM), dtype=jnp.float32)
    weights, biases = init_params(kp)

    out = jax.block_until_ready(node_model_forward(x, weights, biases))
    ref = reference_forward(x, weights, biases)

    assert out.shape == (batch, OUT_DIM), out.shape
    # bf16 matmuls + exact layer fold -> slightly looser tolerance than pure f32.
    assert jnp.allclose(out, ref, atol=2e-2, rtol=2e-2), (
        float(jnp.max(jnp.abs(out - ref))))
    print("KERNEL_OK")
</pallas_src>

<mosaic_0001>
module attributes {stable_mosaic.version = 11 : i64} {
  func.func @mlp_kernel(%arg0: i32, %arg1: memref<8x16xf32, #tpu.memory_space<vmem>>, %arg2: memref<16x128xf32, #tpu.memory_space<vmem>>, %arg3: memref<7x128x128xbf16, #tpu.memory_space<vmem>>, %arg4: memref<9x128xf32, #tpu.memory_space<vmem>>, %arg5: memref<8x128xf32, #tpu.memory_space<vmem>>, %arg6: memref<8x2xf32, #tpu.memory_space<vmem>>) attributes {dimension_semantics = [#tpu.dimension_semantics<parallel>], iteration_bounds = array<i64: 1>, scalar_prefetch = 0 : i64, scratch_operands = 0 : i64, tpu.core_type = #tpu.core_type<tc>, window_params = [{transform_indices = @transform_0, window_bounds = array<i64: 8, 16>}, {pipeline_mode = #tpu.pipeline_mode<synchronous>, transform_indices = @transform_1, window_bounds = array<i64: 16, 128>}, {pipeline_mode = #tpu.pipeline_mode<synchronous>, transform_indices = @transform_2, window_bounds = array<i64: 7, 128, 128>}, {pipeline_mode = #tpu.pipeline_mode<synchronous>, transform_indices = @transform_3, window_bounds = array<i64: 9, 128>}, {pipeline_mode = #tpu.pipeline_mode<synchronous>, transform_indices = @transform_4, window_bounds = array<i64: 8, 128>}, {transform_indices = @transform_5, window_bounds = array<i64: 8, 2>}]} {
    %c0 = arith.constant 0 : index
    %c0_0 = arith.constant 0 : index
    %0 = vector.load %arg4[%c0, %c0_0] : memref<9x128xf32, #tpu.memory_space<vmem>>, vector<9x128xf32>
    %c0_1 = arith.constant 0 : index
    %c0_2 = arith.constant 0 : index
    %1 = vector.load %arg1[%c0_1, %c0_2] : memref<8x16xf32, #tpu.memory_space<vmem>>, vector<8x16xf32>
    %c0_3 = arith.constant 0 : index
    %c0_4 = arith.constant 0 : index
    %2 = vector.load %arg2[%c0_3, %c0_4] : memref<16x128xf32, #tpu.memory_space<vmem>>, vector<16x128xf32>
    %cst = arith.constant dense<0.000000e+00> : vector<8x128xf32>
    %3 = tpu.matmul %1, %2, %cst {dimension_numbers = #tpu.dot_dimension_numbers<[1], [0], [0], [1], [0, 0, 1, 1], [], []>} : vector<8x16xf32>, vector<16x128xf32>, vector<8x128xf32> -> vector<8x128xf32>
    %4 = vector.extract_strided_slice %0 {offsets = [0, 0], sizes = [1, 128], strides = [1, 1]} : vector<9x128xf32> to vector<1x128xf32>
    %5 = vector.broadcast %4 : vector<1x128xf32> to vector<8x128xf32>
    %6 = arith.addf %3, %5 : vector<8x128xf32>
    %cst_5 = arith.constant 0.000000e+00 : f32
    %7 = vector.broadcast %cst_5 : f32 to vector<8x128xf32>
    %8 = arith.maximumf %6, %7 : vector<8x128xf32>
    %9 = arith.truncf %8 : vector<8x128xf32> to vector<8x128xbf16>
    %c0_6 = arith.constant 0 : index
    %c0_7 = arith.constant 0 : index
    %c0_8 = arith.constant 0 : index
    %10 = vector.load %arg3[%c0_6, %c0_7, %c0_8] : memref<7x128x128xbf16, #tpu.memory_space<vmem>>, vector<1x128x128xbf16>
    %11 = vector.shape_cast %10 : vector<1x128x128xbf16> to vector<128x128xbf16>
    %cst_9 = arith.constant dense<0.000000e+00> : vector<8x128xf32>
    %12 = tpu.matmul %9, %11, %cst_9 {dimension_numbers = #tpu.dot_dimension_numbers<[1], [0], [0], [1], [0, 0, 1, 1], [], []>} : vector<8x128xbf16>, vector<128x128xbf16>, vector<8x128xf32> -> vector<8x128xf32>
    %13 = vector.extract_strided_slice %0 {offsets = [1, 0], sizes = [1, 128], strides = [1, 1]} : vector<9x128xf32> to vector<1x128xf32>
    %14 = vector.broadcast %13 : vector<1x128xf32> to vector<8x128xf32>
    %15 = arith.addf %12, %14 : vector<8x128xf32>
    %cst_10 = arith.constant 0.000000e+00 : f32
    %16 = vector.broadcast %cst_10 : f32 to vector<8x128xf32>
    %17 = arith.maximumf %15, %16 : vector<8x128xf32>
    %18 = arith.truncf %17 : vector<8x128xf32> to vector<8x128xbf16>
    %c1 = arith.constant 1 : index
    %c0_11 = arith.constant 0 : index
    %c0_12 = arith.constant 0 : index
    %19 = vector.load %arg3[%c1, %c0_11, %c0_12] : memref<7x128x128xbf16, #tpu.memory_space<vmem>>, vector<1x128x128xbf16>
    %20 = vector.shape_cast %19 : vector<1x128x128xbf16> to vector<128x128xbf16>
    %cst_13 = arith.constant dense<0.000000e+00> : vector<8x128xf32>
    %21 = tpu.matmul %18, %20, %cst_13 {dimension_numbers = #tpu.dot_dimension_numbers<[1], [0], [0], [1], [0, 0, 1, 1], [], []>} : vector<8x128xbf16>, vector<128x128xbf16>, vector<8x128xf32> -> vector<8x128xf32>
    %22 = vector.extract_strided_slice %0 {offsets = [2, 0], sizes = [1, 128], strides = [1, 1]} : vector<9x128xf32> to vector<1x128xf32>
    %23 = vector.broadcast %22 : vector<1x128xf32> to vector<8x128xf32>
    %24 = arith.addf %21, %23 : vector<8x128xf32>
    %cst_14 = arith.constant 0.000000e+00 : f32
    %25 = vector.broadcast %cst_14 : f32 to vector<8x128xf32>
    %26 = arith.maximumf %24, %25 : vector<8x128xf32>
    %27 = arith.truncf %26 : vector<8x128xf32> to vector<8x128xbf16>
    %c2 = arith.constant 2 : index
    %c0_15 = arith.constant 0 : index
    %c0_16 = arith.constant 0 : index
    %28 = vector.load %arg3[%c2, %c0_15, %c0_16] : memref<7x128x128xbf16, #tpu.memory_space<vmem>>, vector<1x128x128xbf16>
    %29 = vector.shape_cast %28 : vector<1x128x128xbf16> to vector<128x128xbf16>
    %cst_17 = arith.constant dense<0.000000e+00> : vector<8x128xf32>
    %30 = tpu.matmul %27, %29, %cst_17 {dimension_numbers = #tpu.dot_dimension_numbers<[1], [0], [0], [1], [0, 0, 1, 1], [], []>} : vector<8x128xbf16>, vector<128x128xbf16>, vector<8x128xf32> -> vector<8x128xf32>
    %31 = vector.extract_strided_slice %0 {offsets = [3, 0], sizes = [1, 128], strides = [1, 1]} : vector<9x128xf32> to vector<1x128xf32>
    %32 = vector.broadcast %31 : vector<1x128xf32> to vector<8x128xf32>
    %33 = arith.addf %30, %32 : vector<8x128xf32>
    %cst_18 = arith.constant 0.000000e+00 : f32
    %34 = vector.broadcast %cst_18 : f32 to vector<8x128xf32>
    %35 = arith.maximumf %33, %34 : vector<8x128xf32>
    %36 = arith.truncf %35 : vector<8x128xf32> to vector<8x128xbf16>
    %c3 = arith.constant 3 : index
    %c0_19 = arith.constant 0 : index
    %c0_20 = arith.constant 0 : index
    %37 = vector.load %arg3[%c3, %c0_19, %c0_20] : memref<7x128x128xbf16, #tpu.memory_space<vmem>>, vector<1x128x128xbf16>
    %38 = vector.shape_cast %37 : vector<1x128x128xbf16> to vector<128x128xbf16>
    %cst_21 = arith.constant dense<0.000000e+00> : vector<8x128xf32>
    %39 = tpu.matmul %36, %38, %cst_21 {dimension_numbers = #tpu.dot_dimension_numbers<[1], [0], [0], [1], [0, 0, 1, 1], [], []>} : vector<8x128xbf16>, vector<128x128xbf16>, vector<8x128xf32> -> vector<8x128xf32>
    %40 = vector.extract_strided_slice %0 {offsets = [4, 0], sizes = [1, 128], strides = [1, 1]} : vector<9x128xf32> to vector<1x128xf32>
    %41 = vector.broadcast %40 : vector<1x128xf32> to vector<8x128xf32>
    %42 = arith.addf %39, %41 : vector<8x128xf32>
    %cst_22 = arith.constant 0.000000e+00 : f32
    %43 = vector.broadcast %cst_22 : f32 to vector<8x128xf32>
    %44 = arith.maximumf %42, %43 : vector<8x128xf32>
    %45 = arith.truncf %44 : vector<8x128xf32> to vector<8x128xbf16>
    %c4 = arith.constant 4 : index
    %c0_23 = arith.constant 0 : index
    %c0_24 = arith.constant 0 : index
    %46 = vector.load %arg3[%c4, %c0_23, %c0_24] : memref<7x128x128xbf16, #tpu.memory_space<vmem>>, vector<1x128x128xbf16>
    %47 = vector.shape_cast %46 : vector<1x128x128xbf16> to vector<128x128xbf16>
    %cst_25 = arith.constant dense<0.000000e+00> : vector<8x128xf32>
    %48 = tpu.matmul %45, %47, %cst_25 {dimension_numbers = #tpu.dot_dimension_numbers<[1], [0], [0], [1], [0, 0, 1, 1], [], []>} : vector<8x128xbf16>, vector<128x128xbf16>, vector<8x128xf32> -> vector<8x128xf32>
    %49 = vector.extract_strided_slice %0 {offsets = [5, 0], sizes = [1, 128], strides = [1, 1]} : vector<9x128xf32> to vector<1x128xf32>
    %50 = vector.broadcast %49 : vector<1x128xf32> to vector<8x128xf32>
    %51 = arith.addf %48, %50 : vector<8x128xf32>
    %cst_26 = arith.constant 0.000000e+00 : f32
    %52 = vector.broadcast %cst_26 : f32 to vector<8x128xf32>
    %53 = arith.maximumf %51, %52 : vector<8x128xf32>
    %54 = arith.truncf %53 : vector<8x128xf32> to vector<8x128xbf16>
    %c5 = arith.constant 5 : index
    %c0_27 = arith.constant 0 : index
    %c0_28 = arith.constant 0 : index
    %55 = vector.load %arg3[%c5, %c0_27, %c0_28] : memref<7x128x128xbf16, #tpu.memory_space<vmem>>, vector<1x128x128xbf16>
    %56 = vector.shape_cast %55 : vector<1x128x128xbf16> to vector<128x128xbf16>
    %cst_29 = arith.constant dense<0.000000e+00> : vector<8x128xf32>
    %57 = tpu.matmul %54, %56, %cst_29 {dimension_numbers = #tpu.dot_dimension_numbers<[1], [0], [0], [1], [0, 0, 1, 1], [], []>} : vector<8x128xbf16>, vector<128x128xbf16>, vector<8x128xf32> -> vector<8x128xf32>
    %58 = vector.extract_strided_slice %0 {offsets = [6, 0], sizes = [1, 128], strides = [1, 1]} : vector<9x128xf32> to vector<1x128xf32>
    %59 = vector.broadcast %58 : vector<1x128xf32> to vector<8x128xf32>
    %60 = arith.addf %57, %59 : vector<8x128xf32>
    %cst_30 = arith.constant 0.000000e+00 : f32
    %61 = vector.broadcast %cst_30 : f32 to vector<8x128xf32>
    %62 = arith.maximumf %60, %61 : vector<8x128xf32>
    %63 = arith.truncf %62 : vector<8x128xf32> to vector<8x128xbf16>
    %c6 = arith.constant 6 : index
    %c0_31 = arith.constant 0 : index
    %c0_32 = arith.constant 0 : index
    %64 = vector.load %arg3[%c6, %c0_31, %c0_32] : memref<7x128x128xbf16, #tpu.memory_space<vmem>>, vector<1x128x128xbf16>
    %65 = vector.shape_cast %64 : vector<1x128x128xbf16> to vector<128x128xbf16>
    %cst_33 = arith.constant dense<0.000000e+00> : vector<8x128xf32>
    %66 = tpu.matmul %63, %65, %cst_33 {dimension_numbers = #tpu.dot_dimension_numbers<[1], [0], [0], [1], [0, 0, 1, 1], [], []>} : vector<8x128xbf16>, vector<128x128xbf16>, vector<8x128xf32> -> vector<8x128xf32>
    %67 = vector.extract_strided_slice %0 {offsets = [7, 0], sizes = [1, 128], strides = [1, 1]} : vector<9x128xf32> to vector<1x128xf32>
    %68 = vector.broadcast %67 : vector<1x128xf32> to vector<8x128xf32>
    %69 = arith.addf %66, %68 : vector<8x128xf32>
    %cst_34 = arith.constant 0.000000e+00 : f32
    %70 = vector.broadcast %cst_34 : f32 to vector<8x128xf32>
    %71 = arith.maximumf %69, %70 : vector<8x128xf32>
    %72 = arith.truncf %71 : vector<8x128xf32> to vector<8x128xbf16>
    %c0_35 = arith.constant 0 : index
    %c0_36 = arith.constant 0 : index
    %73 = vector.load %arg5[%c0_35, %c0_36] : memref<8x128xf32, #tpu.memory_space<vmem>>, vector<8x128xf32>
    %74 = vector.extract_strided_slice %73 {offsets = [0, 0], sizes = [1, 128], strides = [1, 1]} : vector<8x128xf32> to vector<1x128xf32>
    %75 = arith.extf %72 : vector<8x128xbf16> to vector<8x128xf32>
    %76 = vector.broadcast %74 : vector<1x128xf32> to vector<8x128xf32>
    %77 = arith.mulf %75, %76 : vector<8x128xf32>
    %cst_37 = arith.constant dense<0.000000e+00> : vector<8xf32>
    %78 = vector.multi_reduction <add>, %77, %cst_37 [1] : vector<8x128xf32> to vector<8xf32>
    %79 = vector.shape_cast %78 : vector<8xf32> to vector<8x1xf32>
    %80 = vector.extract_strided_slice %73 {offsets = [1, 0], sizes = [1, 128], strides = [1, 1]} : vector<8x128xf32> to vector<1x128xf32>
    %81 = arith.extf %72 : vector<8x128xbf16> to vector<8x128xf32>
    %82 = vector.broadcast %80 : vector<1x128xf32> to vector<8x128xf32>
    %83 = arith.mulf %81, %82 : vector<8x128xf32>
    %cst_38 = arith.constant dense<0.000000e+00> : vector<8xf32>
    %84 = vector.multi_reduction <add>, %83, %cst_38 [1] : vector<8x128xf32> to vector<8xf32>
    %85 = vector.shape_cast %84 : vector<8xf32> to vector<8x1xf32>
    %86 = tpu.concatenate %79, %85 in 1 : vector<8x1xf32>, vector<8x1xf32> -> vector<8x2xf32>
    %87 = vector.extract_strided_slice %0 {offsets = [8, 0], sizes = [1, 2], strides = [1, 1]} : vector<9x128xf32> to vector<1x2xf32>
    %88 = vector.broadcast %87 : vector<1x2xf32> to vector<8x2xf32>
    %89 = arith.addf %86, %88 : vector<8x2xf32>
    %c0_39 = arith.constant 0 : index
    %c0_40 = arith.constant 0 : index
    %90 = vector.load %arg6[%c0_39, %c0_40] : memref<8x2xf32, #tpu.memory_space<vmem>>, vector<8x2xf32>
    tpu.vector_store %arg6[%c0_39, %c0_40], %89 {strides = array<i32>} : memref<8x2xf32, #tpu.memory_space<vmem>>, vector<8x2xf32>,
    return
  }
  func.func @transform_0(%arg0: i32) -> (i32, i32) {
    %c0_i32 = arith.constant 0 : i32
    %c0_i32_0 = arith.constant 0 : i32
    return %arg0, %c0_i32 : i32, i32
  }
  func.func @transform_1(%arg0: i32) -> (i32, i32) {
    %c0_i32 = arith.constant 0 : i32
    %c0_i32_0 = arith.constant 0 : i32
    %c0_i32_1 = arith.constant 0 : i32
    return %c0_i32, %c0_i32_0 : i32, i32
  }
  func.func @transform_2(%arg0: i32) -> (i32, i32, i32) {
    %c0_i32 = arith.constant 0 : i32
    %c0_i32_0 = arith.constant 0 : i32
    %c0_i32_1 = arith.constant 0 : i32
    %c0_i32_2 = arith.constant 0 : i32
    return %c0_i32, %c0_i32_0, %c0_i32_1 : i32, i32, i32
  }
  func.func @transform_3(%arg0: i32) -> (i32, i32) {
    %c0_i32 = arith.constant 0 : i32
    %c0_i32_0 = arith.constant 0 : i32
    %c0_i32_1 = arith.constant 0 : i32
    return %c0_i32, %c0_i32_0 : i32, i32
  }
  func.func @transform_4(%arg0: i32) -> (i32, i32) {
    %c0_i32 = arith.constant 0 : i32
    %c0_i32_0 = arith.constant 0 : i32
    %c0_i32_1 = arith.constant 0 : i32
    return %c0_i32, %c0_i32_0 : i32, i32
  }
  func.func @transform_5(%arg0: i32) -> (i32, i32) {
    %c0_i32 = arith.constant 0 : i32
    %c0_i32_0 = arith.constant 0 : i32
    return %arg0, %c0_i32 : i32, i32
  }
}

</mosaic_0001>

<bundles_post_ra>
// kernel: node_model_forward.1
= control target key start
LH: loop header
LB: loop body
LE: loop exit
PB: predicated region body
PF: predicated region fallthrough
CT: control target
= control target key end

     0   :  { %v1340_v0 = vmov 0.0|0.0   ;;  %vm1341_vm0 = vmmov 0   ;;  %v1342_v3 = vmov 0.0   ;;  %vm30_vm1 = vcmask 130048   ;;  %s1662_s1 = inlined_call_operand.vmem [shape: f32[16,128], index: 1, kind: input, shape index: {}]   ;;  %s1663_s0 = inlined_call_operand.vmem [shape: f32[8,16], index: 0, kind: input, shape index: {}]   ;;  %s1664_s2 = inlined_call_operand.vmem [shape: bf16[7,128,128], index: 2, kind: input, shape index: {}]   ;;  %s1665_s3 = inlined_call_operand.vmem [shape: f32[9,128], index: 3, kind: input, shape index: {}]   ;;  %s1666_s4 = inlined_call_operand.vmem [shape: f32[8,128], index: 4, kind: input, shape index: {}]   ;;  %s1667_s5 = inlined_call_operand.vmem [shape: f32[8,2], index: 5, kind: output, shape index: {}]  }
   0x1   :  { %1278 = vmatprep.subr.bf16.mxu0 %v1340_v0  ;;  %v24_v1 = vld [vmem:[%s1662_s1] sm:$0xff]  ;;  %v25_v2 = vld [vmem:[%s1662_s1 + $0x8] sm:$0xff]  ;;  %1135 = vmatprep.mubr.msk.f32.mxu0 %vm1341_vm0, %v1342_v3  ;;  %v1286_v8 = vld [vmem:[%s1664_s2 + $0x10] sm:$0xff]   ;;  %v26_v20 = vlaneseq  ;;  %vm898_vm2 = vcmask 7168   ;;  %vm905_vm3 = vcmask 15360  }
   0x2   :  { %v1279_v4 = vpack.c.bf16 %v25_v2, %v24_v1  ;;  %1138 = vmatprep.subr.bf16.mxu1 %v1342_v3  ;;  %v1284_v5 = vld [vmem:[%s1664_s2] sm:$0xff]   ;;  %1154 = vmatprep.mubr.msk.bf16.mxu1 %vm1341_vm0, %v1342_v3  ;;  %v1285_v7 = vld [vmem:[%s1664_s2 + $0x8] sm:$0xff]   ;;  %v1287_v9 = vld [vmem:[%s1664_s2 + $0x18] sm:$0xff]  }
   0x3   :  { %v23_v6 = vld [vmem:[%s1663_s0] sm:$0xff]  ;;  %1139 = vmatpush3.bf16.msra.mxu1 %v1284_v5  ;;  %v1289_v11 = vld [vmem:[%s1664_s2 + $0x28] sm:$0xff]   ;;  %v1290_v12 = vld [vmem:[%s1664_s2 + $0x30] sm:$0xff]   ;;  %v1446_v21 = vshrl.u32 %v26_v20, 7 }
   0x4   :  { %1280 = vmatpush3.bf16.msra.mxu0 %v1279_v4  ;;  %1140 = vmatprep.subr.bf16.mxu1 %v1342_v3  ;;  %v1288_v10 = vld [vmem:[%s1664_s2 + $0x20] sm:$0xff]   ;;  %v1291_v13 = vld [vmem:[%s1664_s2 + $0x38] sm:$0xff]   ;;  %v1293_v15 = vld [vmem:[%s1664_s2 + $0x48] sm:$0xff]  }
   0x5   :  { %1158 = vmatprep.subr.bf16.mxu0 %v1342_v3  ;;  %v1292_v14 = vld [vmem:[%s1664_s2 + $0x40] sm:$0xff]   ;;  %v1294_v16 = vld [vmem:[%s1664_s2 + $0x50] sm:$0xff]   ;;  %v1295_v17 = vld [vmem:[%s1664_s2 + $0x58] sm:$0xff]   ;;  %v28_v22 = vsub.s32 0, %v1446_v21  ;;  %v124_v38 = vsub.s32 1, %v1446_v21  ;;  %v235_v55 = vsub.s32 2, %v1446_v21 }
   0x6   :  { %v1296_v18 = vld [vmem:[%s1664_s2 + $0x60] sm:$0xff]   ;;  %v1297_v19 = vld [vmem:[%s1664_s2 + $0x68] sm:$0xff]   ;;  %v1298_v30 = vld [vmem:[%s1664_s2 + $0x70] sm:$0xff]  }
   0x7   :  { %1136 = vmatmul.mubr.msk.f32.vlgmr.msra.gmra.mrb[0].mxu0 %vm30_vm1, %v23_v6  ;;  %1141 = vmatpush3.bf16.msra.mxu1 %v1285_v7  ;;  %v1452_v23 = vld [vmem:[%s1665_s3] sm:$0xff]  ;;  %v1299_v31 = vld [vmem:[%s1664_s2 + $0x78] sm:$0xff]   ;;  %v1301_v33 = vld [vmem:[%s1664_s2 + $0x88] sm:$0xff]  }
   0x8   :  { %1174 = vmatprep.mubr.msk.bf16.mxu0 %vm1341_vm0, %v1342_v3  ;;  %1142 = vmatprep.subr.bf16.mxu1 %v1342_v3  ;;  %v29_v24 = vrot.slane %v1452_v23, %v28_v22  ;;  %v1300_v32 = vld [vmem:[%s1664_s2 + $0x80] sm:$0xff]   ;;  %v1302_v34 = vld [vmem:[%s1664_s2 + $0x90] sm:$0xff]   ;;  %v1303_v35 = vld [vmem:[%s1664_s2 + $0x98] sm:$0xff]   ;;  %v125_v39 = vrot.slane %v1452_v23, %v124_v38  ;;  %v236_v56 = vrot.slane %v1452_v23, %v235_v55 }
   0x9   :  { %1159 = vmatpush3.bf16.msra.mxu0 %v1292_v14  ;;  %v1304_v36 = vld [vmem:[%s1664_s2 + $0xa0] sm:$0xff]   ;;  %v1305_v37 = vld [vmem:[%s1664_s2 + $0xa8] sm:$0xff]   ;;  %v1306_v47 = vld [vmem:[%s1664_s2 + $0xb0] sm:$0xff]  }
   0xa   :  { %1160 = vmatprep.subr.bf16.mxu0 %v1342_v3  ;;  %v1307_v48 = vld [vmem:[%s1664_s2 + $0xb8] sm:$0xff]   ;;  %v1308_v49 = vld [vmem:[%s1664_s2 + $0xc0] sm:$0xff]   ;;  %v1309_v50 = vld [vmem:[%s1664_s2 + $0xc8] sm:$0xff]  }
   0xb   :  { %1143 = vmatpush3.bf16.msra.mxu1 %v1286_v8  ;;  %v1310_v51 = vld [vmem:[%s1664_s2 + $0xd0] sm:$0xff]   ;;  %v1311_v52 = vld [vmem:[%s1664_s2 + $0xd8] sm:$0xff]   ;;  %v1312_v53 = vld [vmem:[%s1664_s2 + $0xe0] sm:$0xff]  }
   0xc   :  { %1144 = vmatprep.subr.bf16.mxu1 %v1342_v3  ;;  %v1313_v54 = vld [vmem:[%s1664_s2 + $0xe8] sm:$0xff]   ;;  %v1314_v0 = vld [vmem:[%s1664_s2 + $0xf0] sm:$0xff]   ;;  %v1315_v1 = vld [vmem:[%s1664_s2 + $0xf8] sm:$0xff]  }
   0xd   :  { %1161 = vmatpush3.bf16.msra.mxu0 %v1293_v15  ;;  %v1316_v2 = vld [vmem:[%s1664_s2 + $0x100] sm:$0xff]   ;;  %v1317_v4 = vld [vmem:[%s1664_s2 + $0x108] sm:$0xff]   ;;  %v1318_v5 = vld [vmem:[%s1664_s2 + $0x110] sm:$0xff]  }
   0xe   :  { %1162 = vmatprep.subr.bf16.mxu0 %v1342_v3  ;;  %v1319_v6 = vld [vmem:[%s1664_s2 + $0x118] sm:$0xff]   ;;  %v1320_v7 = vld [vmem:[%s1664_s2 + $0x120] sm:$0xff]   ;;  %v1321_v8 = vld [vmem:[%s1664_s2 + $0x128] sm:$0xff]  }
   0xf   :  { %1145 = vmatpush3.bf16.msra.mxu1 %v1287_v9  ;;  %v346_v9 = vsub.s32 3, %v1446_v21  ;;  %v1324_v20 = vld [vmem:[%s1664_s2 + $0x140] sm:$0xff]  }
  0x10   :  { %1146 = vmatprep.subr.bf16.mxu1 %v1342_v3 }
  0x11   :  { %1163 = vmatpush3.bf16.msra.mxu0 %v1294_v16 }
  0x12   :  { %1164 = vmatprep.subr.bf16.mxu0 %v1342_v3 }
  0x13   :  { %1147 = vmatpush3.bf16.msra.mxu1 %v1288_v10  ;;  %v347_v10 = vrot.slane %v1452_v23, %v346_v9  ;;  %v882_v9 = vld [vmem:[%s1666_s4] sm:$0xff] }
  0x14   :  { %1148 = vmatprep.subr.bf16.mxu1 %v1342_v3 }
  0x15   :  { %1165 = vmatpush3.bf16.msra.mxu0 %v1295_v17 }
  0x16   :  { %1166 = vmatprep.subr.bf16.mxu0 %v1342_v3 }
  0x17   :  { %1149 = vmatpush3.bf16.msra.mxu1 %v1289_v11 }
  0x18   :  { %1150 = vmatprep.subr.bf16.mxu1 %v1342_v3 }
  0x19   :  { %1167 = vmatpush3.bf16.msra.mxu0 %v1296_v18  ;;  %v1322_v18 = vld [vmem:[%s1664_s2 + $0x130] sm:$0xff]  }
  0x1a   :  { %1168 = vmatprep.subr.bf16.mxu0 %v1342_v3 }
  0x1b   :  { %1151 = vmatpush3.bf16.msra.mxu1 %v1290_v12 }
  0x1c   :  { %1152 = vmatprep.subr.bf16.mxu1 %v1342_v3 }
  0x1d   :  { %1169 = vmatpush3.bf16.msra.mxu0 %v1297_v19  ;;  %v1323_v19 = vld [vmem:[%s1664_s2 + $0x138] sm:$0xff]  }
  0x1e   :  { %1170 = vmatprep.subr.bf16.mxu0 %v1342_v3 }
  0x1f   :  { %1153 = vmatpush3.bf16.msra.mxu1 %v1291_v13 }
  0x20   :  { %1178 = vmatprep.subr.bf16.mxu1 %v1342_v3 }
  0x21   :  { %1171 = vmatpush3.bf16.msra.mxu0 %v1298_v30 }
  0x22   :  { %1172 = vmatprep.subr.bf16.mxu0 %v1342_v3 }
  0x25   :  { %1173 = vmatpush3.bf16.msra.mxu0 %v1299_v31 }
  0x26   :  { %1198 = vmatprep.subr.bf16.mxu0 %v1342_v3 }
  0xda   :  { %v100_v25 = vpop.f32.mrb[0].mxu0 }
  0xdb   :  { %v101_v26 = vadd.f32 %v100_v25, %v29_v24  ;;  %v1137_v27 = vpop.f32.mrb[1].mxu0  ;;  %v1325_v24 = vld [vmem:[%s1664_s2 + $0x148] sm:$0xff]   ;;  %v1326_v25 = vld [vmem:[%s1664_s2 + $0x150] sm:$0xff]  }
  0xdc   :  { %v1328_v27 = vld [vmem:[%s1664_s2 + $0x160] sm:$0xff]  }
  0xdd   :  { %v104_v28 = vmax.f32 %v101_v26, 0.0  ;;  %v1327_v26 = vld [vmem:[%s1664_s2 + $0x158] sm:$0xff]  }
  0xdf   :  { %v105_v29 = vpack.c.bf16 %v104_v28, %v104_v28  ;;  %v1329_v28 = vld [vmem:[%s1664_s2 + $0x168] sm:$0xff]  }
  0xe1   :  { %1155 = vmatmul.mubr.bf16.vlgmr.msra.gmra.mrb[0].mxu1 %v105_v29  ;;  %v457_v29 = vsub.s32 4, %v1446_v21 }
  0xe2   :  { %1194 = vmatprep.mubr.msk.bf16.mxu1 %vm1341_vm0, %v1342_v3  ;;  %1179 = vmatpush3.bf16.msra.mxu1 %v1300_v32 }
  0xe3   :  { %1180 = vmatprep.subr.bf16.mxu1 %v1342_v3  ;;  %v458_v30 = vrot.slane %v1452_v23, %v457_v29 }
  0xe6   :  { %1181 = vmatpush3.bf16.msra.mxu1 %v1301_v33 }
  0xe7   :  { %1182 = vmatprep.subr.bf16.mxu1 %v1342_v3 }
  0xea   :  { %1183 = vmatpush3.bf16.msra.mxu1 %v1302_v34 }
  0xeb   :  { %1184 = vmatprep.subr.bf16.mxu1 %v1342_v3 }
  0xee   :  { %1185 = vmatpush3.bf16.msra.mxu1 %v1303_v35 }
  0xef   :  { %1186 = vmatprep.subr.bf16.mxu1 %v1342_v3 }
  0xf2   :  { %1187 = vmatpush3.bf16.msra.mxu1 %v1304_v36 }
  0xf3   :  { %1188 = vmatprep.subr.bf16.mxu1 %v1342_v3 }
  0xf6   :  { %1189 = vmatpush3.bf16.msra.mxu1 %v1305_v37 }
  0xf7   :  { %1190 = vmatprep.subr.bf16.mxu1 %v1342_v3 }
  0xfa   :  { %1191 = vmatpush3.bf16.msra.mxu1 %v1306_v47  ;;  %v568_v47 = vsub.s32 5, %v1446_v21 }
  0xfb   :  { %1192 = vmatprep.subr.bf16.mxu1 %v1342_v3 }
  0xfe   :  { %1193 = vmatpush3.bf16.msra.mxu1 %v1307_v48  ;;  %v569_v48 = vrot.slane %v1452_v23, %v568_v47 }
  0xff   :  { %1218 = vmatprep.subr.bf16.mxu1 %v1342_v3 }
 0x1b4   :  { %v208_v40 = vpop.f32.mrb[0].mxu1 }
 0x1b5   :  { %v209_v41 = vadd.f32 %v208_v40, %v125_v39  ;;  %v1156_v42 = vpop.f32.mrb[1].mxu1  ;;  %v1330_v39 = vld [vmem:[%s1664_s2 + $0x170] sm:$0xff]   ;;  %v1331_v40 = vld [vmem:[%s1664_s2 + $0x178] sm:$0xff]  }
 0x1b6   :  { %v211_v43 = vpop.f32.mrb[2].mxu1  ;;  %v1333_v42 = vld [vmem:[%s1664_s2 + $0x188] sm:$0xff]  }
 0x1b7   :  { %v214_v44 = vmax.f32 %v209_v41, 0.0  ;;  %v1157_v45 = vpop.f32.mrb[3].mxu1  ;;  %v1332_v41 = vld [vmem:[%s1664_s2 + $0x180] sm:$0xff]   ;;  %v1334_v43 = vld [vmem:[%s1664_s2 + $0x190] sm:$0xff]  }
 0x1b8   :  { %v1336_v45 = vld [vmem:[%s1664_s2 + $0x1a0] sm:$0xff]  }
 0x1b9   :  { %v215_v46 = vpack.c.bf16 %v214_v44, %v214_v44  ;;  %v1335_v44 = vld [vmem:[%s1664_s2 + $0x198] sm:$0xff]  }
 0x1bb   :  { %1175 = vmatmul.mubr.bf16.vlgmr.msra.gmra.mrb[4].mxu0 %v215_v46  ;;  %v1337_v46 = vld [vmem:[%s1664_s2 + $0x1a8] sm:$0xff]  }
 0x1bc   :  { %1214 = vmatprep.mubr.msk.bf16.mxu0 %vm1341_vm0, %v1342_v3  ;;  %1199 = vmatpush3.bf16.msra.mxu0 %v1308_v49 }
 0x1bd   :  { %1200 = vmatprep.subr.bf16.mxu0 %v1342_v3 }
 0x1c0   :  { %1201 = vmatpush3.bf16.msra.mxu0 %v1309_v50 }
 0x1c1   :  { %1202 = vmatprep.subr.bf16.mxu0 %v1342_v3 }
 0x1c4   :  { %1203 = vmatpush3.bf16.msra.mxu0 %v1310_v51 }
 0x1c5   :  { %1204 = vmatprep.subr.bf16.mxu0 %v1342_v3 }
 0x1c8   :  { %1205 = vmatpush3.bf16.msra.mxu0 %v1311_v52 }
 0x1c9   :  { %1206 = vmatprep.subr.bf16.mxu0 %v1342_v3 }
 0x1cc   :  { %1207 = vmatpush3.bf16.msra.mxu0 %v1312_v53 }
 0x1cd   :  { %1208 = vmatprep.subr.bf16.mxu0 %v1342_v3 }
 0x1d0   :  { %1209 = vmatpush3.bf16.msra.mxu0 %v1313_v54 }
 0x1d1   :  { %1210 = vmatprep.subr.bf16.mxu0 %v1342_v3 }
 0x1d4   :  { %1211 = vmatpush3.bf16.msra.mxu0 %v1314_v0 }
 0x1d5   :  { %1212 = vmatprep.subr.bf16.mxu0 %v1342_v3 }
 0x1d8   :  { %1213 = vmatpush3.bf16.msra.mxu0 %v1315_v1 }
 0x1d9   :  { %1238 = vmatprep.subr.bf16.mxu0 %v1342_v3 }
 0x28e   :  { %v319_v57 = vpop.f32.mrb[4].mxu0 }
 0x28f   :  { %v320_v58 = vadd.f32 %v319_v57, %v236_v56  ;;  %v1176_v59 = vpop.f32.mrb[5].mxu0  ;;  %v1338_v56 = vld [vmem:[%s1664_s2 + $0x1b0] sm:$0xff]   ;;  %v1339_v57 = vld [vmem:[%s1664_s2 + $0x1b8] sm:$0xff]  }
 0x290   :  { %v322_v60 = vpop.f32.mrb[6].mxu0 }
 0x291   :  { %v325_v61 = vmax.f32 %v320_v58, 0.0  ;;  %v1177_v62 = vpop.f32.mrb[7].mxu0  ;;  %v679_v58 = vsub.s32 6, %v1446_v21 }
 0x293   :  { %v326_v63 = vpack.c.bf16 %v325_v61, %v325_v61  ;;  %v680_v59 = vrot.slane %v1452_v23, %v679_v58 }
 0x295   :  { %1195 = vmatmul.mubr.bf16.vlgmr.msra.gmra.mrb[4].mxu1 %v326_v63 }
 0x296   :  { %1234 = vmatprep.mubr.msk.bf16.mxu1 %vm1341_vm0, %v1342_v3  ;;  %1219 = vmatpush3.bf16.msra.mxu1 %v1316_v2 }
 0x297   :  { %1220 = vmatprep.subr.bf16.mxu1 %v1342_v3 }
 0x29a   :  { %1221 = vmatpush3.bf16.msra.mxu1 %v1317_v4  ;;  %v790_v4 = vsub.s32 7, %v1446_v21 }
 0x29b   :  { %1222 = vmatprep.subr.bf16.mxu1 %v1342_v3 }
 0x29e   :  { %1223 = vmatpush3.bf16.msra.mxu1 %v1318_v5 }
 0x29f   :  { %1224 = vmatprep.subr.bf16.mxu1 %v1342_v3 }
 0x2a2   :  { %1225 = vmatpush3.bf16.msra.mxu1 %v1319_v6 }
 0x2a3   :  { %1226 = vmatprep.subr.bf16.mxu1 %v1342_v3 }
 0x2a6   :  { %1227 = vmatpush3.bf16.msra.mxu1 %v1320_v7 }
 0x2a7   :  { %1228 = vmatprep.subr.bf16.mxu1 %v1342_v3 }
 0x2aa   :  { %1229 = vmatpush3.bf16.msra.mxu1 %v1321_v8 }
 0x2ab   :  { %1230 = vmatprep.subr.bf16.mxu1 %v1342_v3 }
 0x2ae   :  { %1231 = vmatpush3.bf16.msra.mxu1 %v1322_v18  ;;  %v1064_v18 = vld [vmem:[%s1665_s3 + $0x8] ss:$0 sm:$0xff] }
 0x2af   :  { %1232 = vmatprep.subr.bf16.mxu1 %v1342_v3 }
 0x2b2   :  { %1233 = vmatpush3.bf16.msra.mxu1 %v1323_v19 }
 0x2b3   :  { %1258 = vmatprep.subr.bf16.mxu1 %v1342_v3 }
 0x368   :  { %v430_v11 = vpop.f32.mrb[4].mxu1 }
 0x369   :  { %v431_v12 = vadd.f32 %v430_v11, %v347_v10  ;;  %v1196_v13 = vpop.f32.mrb[5].mxu1 }
 0x36a   :  { %v433_v14 = vpop.f32.mrb[6].mxu1  ;;  %v887_v13 = vrot.slane %v882_v9, %v28_v22 }
 0x36b   :  { %v436_v15 = vmax.f32 %v431_v12, 0.0  ;;  %v1197_v16 = vpop.f32.mrb[7].mxu1 }
 0x36c   :  { %v894_v16 = vrot.slane %v882_v9, %v124_v38 }
 0x36d   :  { %v437_v17 = vpack.c.bf16 %v436_v15, %v436_v15 }
 0x36f   :  { %1215 = vmatmul.mubr.bf16.vlgmr.msra.gmra.mrb[8].mxu0 %v437_v17 }
 0x370   :  { %1254 = vmatprep.mubr.msk.bf16.mxu0 %vm1341_vm0, %v1342_v3  ;;  %1239 = vmatpush3.bf16.msra.mxu0 %v1324_v20 }
 0x371   :  { %1240 = vmatprep.subr.bf16.mxu0 %v1342_v3 }
 0x374   :  { %1241 = vmatpush3.bf16.msra.mxu0 %v1325_v24 }
 0x375   :  { %1242 = vmatprep.subr.bf16.mxu0 %v1342_v3 }
 0x378   :  { %1243 = vmatpush3.bf16.msra.mxu0 %v1326_v25 }
 0x379   :  { %1244 = vmatprep.subr.bf16.mxu0 %v1342_v3 }
 0x37c   :  { %1245 = vmatpush3.bf16.msra.mxu0 %v1327_v26 }
 0x37d   :  { %1246 = vmatprep.subr.bf16.mxu0 %v1342_v3 }
 0x380   :  { %1247 = vmatpush3.bf16.msra.mxu0 %v1328_v27 }
 0x381   :  { %1248 = vmatprep.subr.bf16.mxu0 %v1342_v3 }
 0x384   :  { %1249 = vmatpush3.bf16.msra.mxu0 %v1329_v28 }
 0x385   :  { %1250 = vmatprep.subr.bf16.mxu0 %v1342_v3 }
 0x388   :  { %1251 = vmatpush3.bf16.msra.mxu0 %v1330_v39 }
 0x389   :  { %1252 = vmatprep.subr.bf16.mxu0 %v1342_v3 }
 0x38c   :  { %1253 = vmatpush3.bf16.msra.mxu0 %v1331_v40 }
 0x442   :  { %v541_v31 = vpop.f32.mrb[8].mxu0 }
 0x443   :  { %v542_v32 = vadd.f32 %v541_v31, %v458_v30  ;;  %v1216_v33 = vpop.f32.mrb[9].mxu0 }
 0x444   :  { %v544_v34 = vpop.f32.mrb[10].mxu0 }
 0x445   :  { %v547_v35 = vmax.f32 %v542_v32, 0.0  ;;  %v1217_v36 = vpop.f32.mrb[11].mxu0 }
 0x447   :  { %v548_v37 = vpack.c.bf16 %v547_v35, %v547_v35 }
 0x449   :  { %1235 = vmatmul.mubr.bf16.vlgmr.msra.gmra.mrb[8].mxu1 %v548_v37 }
 0x44a   :  { %1274 = vmatprep.mubr.msk.bf16.mxu1 %vm1341_vm0, %v1342_v3  ;;  %1259 = vmatpush3.bf16.msra.mxu1 %v1332_v41 }
 0x44b   :  { %1260 = vmatprep.subr.bf16.mxu1 %v1342_v3 }
 0x44e   :  { %1261 = vmatpush3.bf16.msra.mxu1 %v1333_v42 }
 0x44f   :  { %1262 = vmatprep.subr.bf16.mxu1 %v1342_v3 }
 0x452   :  { %1263 = vmatpush3.bf16.msra.mxu1 %v1334_v43 }
 0x453   :  { %1264 = vmatprep.subr.bf16.mxu1 %v1342_v3 }
 0x456   :  { %1265 = vmatpush3.bf16.msra.mxu1 %v1335_v44 }
 0x457   :  { %1266 = vmatprep.subr.bf16.mxu1 %v1342_v3 }
 0x45a   :  { %1267 = vmatpush3.bf16.msra.mxu1 %v1336_v45 }
 0x45b   :  { %1268 = vmatprep.subr.bf16.mxu1 %v1342_v3 }
 0x45e   :  { %1269 = vmatpush3.bf16.msra.mxu1 %v1337_v46 }
 0x45f   :  { %1270 = vmatprep.subr.bf16.mxu1 %v1342_v3 }
 0x462   :  { %1271 = vmatpush3.bf16.msra.mxu1 %v1338_v56 }
 0x463   :  { %1272 = vmatprep.subr.bf16.mxu1 %v1342_v3  ;;  %v791_v3 = vrot.slane %v1452_v23, %v790_v4 }
 0x466   :  { %1273 = vmatpush3.bf16.msra.mxu1 %v1339_v57 }
 0x51c   :  { %v652_v49 = vpop.f32.mrb[8].mxu1 }
 0x51d   :  { %v653_v50 = vadd.f32 %v652_v49, %v569_v48  ;;  %v1236_v51 = vpop.f32.mrb[9].mxu1 }
 0x51e   :  { %v655_v52 = vpop.f32.mrb[10].mxu1 }
 0x51f   :  { %v658_v53 = vmax.f32 %v653_v50, 0.0  ;;  %v1237_v54 = vpop.f32.mrb[11].mxu1 }
 0x521   :  { %v659_v55 = vpack.c.bf16 %v658_v53, %v658_v53 }
 0x523   :  { %1255 = vmatmul.mubr.bf16.vlgmr.msra.gmra.mrb[12].mxu0 %v659_v55 }
 0x5f6   :  { %v763_v60 = vpop.f32.mrb[12].mxu0 }
 0x5f7   :  { %v764_v61 = vadd.f32 %v763_v60, %v680_v59  ;;  %v1256_v62 = vpop.f32.mrb[13].mxu0 }
 0x5f8   :  { %v766_v63 = vpop.f32.mrb[14].mxu0 }
 0x5f9   :  { %v769_v0 = vmax.f32 %v764_v61, 0.0  ;;  %v1257_v1 = vpop.f32.mrb[15].mxu0 }
 0x5fb   :  { %v770_v2 = vpack.c.bf16 %v769_v0, %v769_v0 }
 0x5fd   :  { %1275 = vmatmul.mubr.bf16.vlgmr.msra.gmra.mrb[12].mxu1 %v770_v2 }
 0x6d0   :  { %v874_v5 = vpop.f32.mrb[12].mxu1 }
 0x6d1   :  { %v875_v6 = vadd.f32 %v874_v5, %v791_v3  ;;  %v1276_v7 = vpop.f32.mrb[13].mxu1 }
 0x6d2   :  { %v877_v8 = vpop.f32.mrb[14].mxu1 }
 0x6d3   :  { %v880_v10 = vmax.f32 %v875_v6, 0.0  ;;  %v1277_v11 = vpop.f32.mrb[15].mxu1 }
 0x6d5   :  { %v881_v12 = vpack.c.bf16 %v880_v10, %v880_v10 }
 0x6d7   :  { %v883_v14 = vunpack.c.l.bf16 %v881_v12 }
 0x6d9   :  { %v888_v15 = vmul.f32 %v887_v13, %v883_v14  ;;  %v895_v23 = vmul.f32 %v894_v16, %v883_v14 }
 0x6db   :  { %889 = vadd.xlane.f32.xlu0 %v888_v15 }
 0x6df   :  { %896 = vadd.xlane.f32.xlu0 %v895_v23 }
 0x768   :  { %v890_v17 = vpop.xlane.xlu0 %889 }
 0x76c   :  { %v897_v19 = vpop.xlane.xlu0 %896 }
 0x76d   :  { %v899_v20 = vsel %vm898_vm2, %v890_v17, %v897_v19 }
 0x76e   :  { %v904_v24 = vadd.f32 %v1064_v18, %v899_v20 }
 0x770   :  { %906 = vst.msk [vmem:[%s1667_s5] sm:$0xff] %vm905_vm3, %v904_v24 }

</bundles_post_ra>
